<compile_context>
chip_gen: v7x
topology: tpu7x:2x2x1
jax: 0.10.0
libtpu: 0.0.40
codegen_flags: <defaults>
</compile_context>

<pallas_src>
import jax
import jax.numpy as jnp
from jax.experimental import pallas as pl
from jax.experimental.pallas import tpu as pltpu


def _round_up(x, m):
    return ((x + m - 1) // m) * m


def embeder_kernel(x_ref, w1_ref, b1_ref, w2_ref, b2_ref, out_ref):
    # fc1: bf16 x bf16 on the MXU, f32 accumulation; bias add + relu in f32.
    h = jnp.dot(x_ref[...], w1_ref[...], preferred_element_type=jnp.float32)
    b1 = b1_ref[...]                      # read bias once per grid step
    h = jnp.maximum(h + b1, 0.0)
    # fc2: downcast activations to bf16 for the MXU, accumulate in f32.
    o = jnp.dot(h.astype(w2_ref.dtype), w2_ref[...],
                preferred_element_type=jnp.float32)
    b2 = b2_ref[...]
    out_ref[...] = (o + b2).astype(out_ref.dtype)


def embeder_forward(x, w1, b1, w2, b2, *, tile_b=256):
    """x: [B, x_dim]; w1: [x_dim, hid]; b1: [1, hid]; w2: [hid, emb]; b2: [1, emb].

    Weights are stored pre-transposed ([in, out]) so the kernel does plain
    row-major MXU matmuls. Returns [B, emb] in x.dtype.
    """
    B, x_dim = x.shape
    hid = w1.shape[1]
    emb = w2.shape[1]
    out_dtype = x.dtype

    # Adapt the batch tile: keep it a multiple of 8 (sublane) and do not
    # over-pad tiny demo batches; large batches use the full 256-row tile.
    tile_b = min(tile_b, _round_up(B, 8))
    tile_b = _round_up(tile_b, 8)

    # Pad the batch so any tile_b works; padded rows are sliced off below.
    padded_b = _round_up(B, tile_b)
    if padded_b != B:
        x = jnp.pad(x, ((0, padded_b - B), (0, 0)))

    # bf16 operands for full-rate MXU on v5e/v6e/v7x; accumulation stays f32.
    x_bf = x.astype(jnp.bfloat16)
    w1_bf = w1.astype(jnp.bfloat16)
    w2_bf = w2.astype(jnp.bfloat16)
    b1_f = b1.astype(jnp.float32)
    b2_f = b2.astype(jnp.float32)

    grid = (padded_b // tile_b,)

    # Explicit VMEM budget: x/out tiles double-buffered, weights single-buffered.
    vmem_bytes = (
        2 * tile_b * x_dim * 2          # x tiles (bf16, 2 buffers)
        + 2 * tile_b * emb * 4          # out tiles (f32, 2 buffers)
        + x_dim * hid * 2 + hid * emb * 2   # weights (bf16, 1 buffer each)
        + (hid + emb) * 4               # biases (f32)
    )
    vmem_limit = max(int(vmem_bytes) * 4, 16 * 1024 * 1024)

    out = pl.pallas_call(
        embeder_kernel,
        out_shape=jax.ShapeDtypeStruct((padded_b, emb), out_dtype),
        grid_spec=pltpu.PrefetchScalarGridSpec(
            num_scalar_prefetch=0,
            grid=grid,
            in_specs=[
                # Streaming batch tile of x (double-buffered by default).
                pl.BlockSpec((tile_b, x_dim), lambda i: (i, 0)),
                # Constant-index weights/biases: single buffer is enough.
                pl.BlockSpec((x_dim, hid), lambda i: (0, 0),
                             pipeline_mode=pl.Buffered(1)),
                pl.BlockSpec((1, hid), lambda i: (0, 0),
                             pipeline_mode=pl.Buffered(1)),
                pl.BlockSpec((hid, emb), lambda i: (0, 0),
                             pipeline_mode=pl.Buffered(1)),
                pl.BlockSpec((1, emb), lambda i: (0, 0),
                             pipeline_mode=pl.Buffered(1)),
            ],
            out_specs=pl.BlockSpec((tile_b, emb), lambda i: (i, 0)),
        ),
        compiler_params=pltpu.CompilerParams(
            dimension_semantics=("parallel",),   # batch axis -> both TCs on v7x
            vmem_limit_bytes=vmem_limit,
        ),
    )(x_bf, w1_bf, b1_f, w2_bf, b2_f)

    return out[:B] if padded_b != B else out


if __name__ == "__main__":
    # Shapes consistent with the module:
    #   x_dim=256, emb_dim=128 -> hidden = max(x_dim // 2, emb_dim) = 128
    # B=300 exercises both the padding path and a multi-tile grid (2 x 256-row
    # tiles after padding -> both TensorCores active on v7x).
    B, x_dim, emb_dim, n_class = 300, 256, 128, 10
    hid = max(x_dim // 2, emb_dim)

    key = jax.random.PRNGKey(0)
    kx, k1, kb1, k2, kb2 = jax.random.split(key, 5)

    x = jax.random.normal(kx, (B, x_dim), dtype=jnp.float32)

    # Deterministic synthetic parameter init (PyTorch Linear-style uniform bounds).
    bound1 = 1.0 / (x_dim ** 0.5)
    w1 = jax.random.uniform(k1, (x_dim, hid), jnp.float32, -bound1, bound1)
    b1 = jax.random.uniform(kb1, (1, hid), jnp.float32, -bound1, bound1)
    bound2 = 1.0 / (hid ** 0.5)
    w2 = jax.random.uniform(k2, (hid, emb_dim), jnp.float32, -bound2, bound2)
    b2 = jax.random.uniform(kb2, (1, emb_dim), jnp.float32, -bound2, bound2)

    # `centers` parameter exists in the module but is unused in forward().
    centers = jnp.ones((n_class, emb_dim), jnp.float32)  # noqa: F841

    out = embeder_forward(x, w1, b1, w2, b2)
    out = jax.block_until_ready(out)
    assert out.shape == (B, emb_dim)
    assert out.dtype == jnp.float32

    # Reference matching the kernel's bf16-operand / f32-accumulate path.
    xb = x.astype(jnp.bfloat16).astype(jnp.float32)
    w1b = w1.astype(jnp.bfloat16).astype(jnp.float32)
    w2b = w2.astype(jnp.bfloat16).astype(jnp.float32)
    h_ref = jnp.maximum(xb @ w1b + b1, 0.0)
    ref = h_ref.astype(jnp.bfloat16).astype(jnp.float32) @ w2b + b2
    assert jnp.allclose(out, ref, atol=1e-2, rtol=1e-2), "mismatch vs bf16 reference"

    # Loose sanity check against the pure-f32 math of the original module.
    ref_f32 = jnp.maximum(x @ w1 + b1, 0.0) @ w2 + b2
    assert jnp.allclose(out, ref_f32, atol=1e-1, rtol=1e-1), "mismatch vs f32 reference"

    print("KERNEL_OK")
</pallas_src>

<mosaic_0001>
module attributes {stable_mosaic.version = 11 : i64} {
  func.func @embeder_kernel(%arg0: i32, %arg1: memref<256x256xbf16, #tpu.memory_space<vmem>>, %arg2: memref<256x128xbf16, #tpu.memory_space<vmem>>, %arg3: memref<1x128xf32, #tpu.memory_space<vmem>>, %arg4: memref<128x128xbf16, #tpu.memory_space<vmem>>, %arg5: memref<1x128xf32, #tpu.memory_space<vmem>>, %arg6: memref<256x128xf32, #tpu.memory_space<vmem>>) attributes {dimension_semantics = [#tpu.dimension_semantics<parallel>], iteration_bounds = array<i64: 2>, scalar_prefetch = 0 : i64, scratch_operands = 0 : i64, tpu.core_type = #tpu.core_type<tc>, window_params = [{transform_indices = @transform_0, window_bounds = array<i64: 256, 256>}, {pipeline_mode = #tpu.pipeline_mode<synchronous>, transform_indices = @transform_1, window_bounds = array<i64: 256, 128>}, {pipeline_mode = #tpu.pipeline_mode<synchronous>, transform_indices = @transform_2, window_bounds = array<i64: 1, 128>}, {pipeline_mode = #tpu.pipeline_mode<synchronous>, transform_indices = @transform_3, window_bounds = array<i64: 128, 128>}, {pipeline_mode = #tpu.pipeline_mode<synchronous>, transform_indices = @transform_4, window_bounds = array<i64: 1, 128>}, {transform_indices = @transform_5, window_bounds = array<i64: 256, 128>}]} {
    %c0 = arith.constant 0 : index
    %c0_0 = arith.constant 0 : index
    %0 = vector.load %arg1[%c0, %c0_0] : memref<256x256xbf16, #tpu.memory_space<vmem>>, vector<256x256xbf16>
    %c0_1 = arith.constant 0 : index
    %c0_2 = arith.constant 0 : index
    %1 = vector.load %arg2[%c0_1, %c0_2] : memref<256x128xbf16, #tpu.memory_space<vmem>>, vector<256x128xbf16>
    %cst = arith.constant dense<0.000000e+00> : vector<256x128xf32>
    %2 = tpu.matmul %0, %1, %cst {dimension_numbers = #tpu.dot_dimension_numbers<[1], [0], [0], [1], [0, 0, 1, 1], [], []>} : vector<256x256xbf16>, vector<256x128xbf16>, vector<256x128xf32> -> vector<256x128xf32>
    %c0_3 = arith.constant 0 : index
    %c0_4 = arith.constant 0 : index
    %3 = vector.load %arg3[%c0_3, %c0_4] : memref<1x128xf32, #tpu.memory_space<vmem>>, vector<1x128xf32>
    %4 = vector.broadcast %3 : vector<1x128xf32> to vector<256x128xf32>
    %5 = arith.addf %2, %4 : vector<256x128xf32>
    %cst_5 = arith.constant 0.000000e+00 : f32
    %6 = vector.broadcast %cst_5 : f32 to vector<256x128xf32>
    %7 = arith.maximumf %5, %6 : vector<256x128xf32>
    %8 = arith.truncf %7 : vector<256x128xf32> to vector<256x128xbf16>
    %c0_6 = arith.constant 0 : index
    %c0_7 = arith.constant 0 : index
    %9 = vector.load %arg4[%c0_6, %c0_7] : memref<128x128xbf16, #tpu.memory_space<vmem>>, vector<128x128xbf16>
    %cst_8 = arith.constant dense<0.000000e+00> : vector<256x128xf32>
    %10 = tpu.matmul %8, %9, %cst_8 {dimension_numbers = #tpu.dot_dimension_numbers<[1], [0], [0], [1], [0, 0, 1, 1], [], []>} : vector<256x128xbf16>, vector<128x128xbf16>, vector<256x128xf32> -> vector<256x128xf32>
    %c0_9 = arith.constant 0 : index
    %c0_10 = arith.constant 0 : index
    %11 = vector.load %arg5[%c0_9, %c0_10] : memref<1x128xf32, #tpu.memory_space<vmem>>, vector<1x128xf32>
    %12 = vector.broadcast %11 : vector<1x128xf32> to vector<256x128xf32>
    %13 = arith.addf %10, %12 : vector<256x128xf32>
    %c0_11 = arith.constant 0 : index
    %c0_12 = arith.constant 0 : index
    %14 = vector.load %arg6[%c0_11, %c0_12] : memref<256x128xf32, #tpu.memory_space<vmem>>, vector<256x128xf32>
    tpu.vector_store %arg6[%c0_11, %c0_12], %13 {strides = array<i32>} : memref<256x128xf32, #tpu.memory_space<vmem>>, vector<256x128xf32>,
    return
  }
  func.func @transform_0(%arg0: i32) -> (i32, i32) {
    %c0_i32 = arith.constant 0 : i32
    %c0_i32_0 = arith.constant 0 : i32
    return %arg0, %c0_i32 : i32, i32
  }
  func.func @transform_1(%arg0: i32) -> (i32, i32) {
    %c0_i32 = arith.constant 0 : i32
    %c0_i32_0 = arith.constant 0 : i32
    %c0_i32_1 = arith.constant 0 : i32
    return %c0_i32, %c0_i32_0 : i32, i32
  }
  func.func @transform_2(%arg0: i32) -> (i32, i32) {
    %c0_i32 = arith.constant 0 : i32
    %c0_i32_0 = arith.constant 0 : i32
    %c0_i32_1 = arith.constant 0 : i32
    return %c0_i32, %c0_i32_0 : i32, i32
  }
  func.func @transform_3(%arg0: i32) -> (i32, i32) {
    %c0_i32 = arith.constant 0 : i32
    %c0_i32_0 = arith.constant 0 : i32
    %c0_i32_1 = arith.constant 0 : i32
    return %c0_i32, %c0_i32_0 : i32, i32
  }
  func.func @transform_4(%arg0: i32) -> (i32, i32) {
    %c0_i32 = arith.constant 0 : i32
    %c0_i32_0 = arith.constant 0 : i32
    %c0_i32_1 = arith.constant 0 : i32
    return %c0_i32, %c0_i32_0 : i32, i32
  }
  func.func @transform_5(%arg0: i32) -> (i32, i32) {
    %c0_i32 = arith.constant 0 : i32
    %c0_i32_0 = arith.constant 0 : i32
    return %arg0, %c0_i32 : i32, i32
  }
}

</mosaic_0001>

<bundles_post_ra>
// kernel: tpu_custom_call.1
= control target key start
LH: loop header
LB: loop body
LE: loop exit
PB: predicated region body
PF: predicated region fallthrough
CT: control target
= control target key end

     0   :  { %10 = vsyncpa [#allocation3], 0  ;;  %s2198_s0 = inlined_call_operand.hbm [shape: bf16[512,256], index: 0, kind: input, shape index: {}]   ;;  %s2199_s1 = inlined_call_operand.hbm [shape: bf16[256,128], index: 1, kind: input, shape index: {}]   ;;  %s2200_s2 = inlined_call_operand.vmem [shape: f32[1,128], index: 2, kind: input, shape index: {}]   ;;  %s2201_s3 = inlined_call_operand.hbm [shape: bf16[128,128], index: 3, kind: input, shape index: {}]   ;;  %s2202_s4 = inlined_call_operand.vmem [shape: f32[1,128], index: 4, kind: input, shape index: {}]   ;;  %s2203_s5 = inlined_call_operand.hbm [shape: f32[512,128], index: 5, kind: output, shape index: {}]  }
   0x1   :  { %12 = vsyncpa [#allocation3 + $0x1], 0 }
   0x2   :  { %13 = vsyncpa [#allocation6], 0 }
   0x3   :  { %14 = vsyncpa [#allocation4], 0 }
   0x4   :  { %16 = vsyncpa [#allocation4 + $0x1], 0  ;;  %s1805_s18 = smov 0   ;;  %s1807_s19 = smov 0  }
   0x5   :  { %s1809_s20 = smov 0   ;;  %s1811_s21 = smov 0  }
   0x6 LB: > { %s1826_s22 = sadd.s32 4294967295, %s1763_s21   ;;  %s1182_s23 = sadd.s32 4294967294, %s1763_s21   ;;  %s1763_s21 = sphi %s1811_s21, %s2223_s21   ;;  %s1759_s20 = sphi %s1809_s20, %s2222_s20   ;;  %s1755_s19 = sphi %s1807_s19, %s2221_s19   ;;  %s1751_s18 = sphi %s1805_s18, %s2220_s18  }
   0x7   : > { %p42_p0 = scmp.ne.s32.totalorder %s1755_s19, %s1751_s18  ;;  %p2204_p1 = scmp.eq.s32.totalorder %s1826_s22, 0 }
   0x8   : > { %p156_p3 = scmp.eq.s32.totalorder %s1182_s23, 1  ;;  %p1183_p5 = scmp.ge.s32.totalorder %s1763_s21, 1 }
   0x9   : > { %p1835_p4 = por %p2204_p1, %p42_p0  ;;  %p163_p7 = scmp.lt.s32.totalorder %s1763_s21, 3 }
   0xa   : > { %p1840_p6 = por %p156_p3, %p42_p0  ;;  %s1765_s27 = smov [#allocation5]  }
   0xb   : > { %s2207_s24 = scalar_select %p1835_p4, 1, 0 }
   0xc   : > { %s2208_s25 = scalar_select %p1840_p6, 1, 0 }
   0xd   : > { %p1845_p8 = pnand %p1183_p5, %p163_p7  ;;  %s175_s28 = sshll.u32 %s1765_s27, 4  ;;  %s1849_s28 = int_to_ptr.vmem [resolvable:$true] %s175_s28 }
   0xe   : > { %s1766_s30 = smov [#allocation7]   ;;  %s1607_s9 = scalar_lea.hbm %s2199_s1, 2048 }
   0xf   : > { %p1474_p9 = pneg %p1845_p8  ;;  %s191_s6 = sshll.u32 %s1766_s30, 4  ;;  %s1860_s6 = int_to_ptr.vmem [resolvable:$true] %s191_s6 }
  0x10   : > { %p1608_p12 = scmp.ne.s32.totalorder %s2199_s1, %s1607_s9  ;;  %p1614_p5 = scmp.lt.u32.totalorder %s1607_s9, %s2199_s1 }
  0x11   : > { %p1856_p11 = pnand %p1474_p9, %p2204_p1 }
  0x13   : > { %p1609_p13 = pneg %p1856_p11 }
  0x15   : > { %p1610_p0 = pnand %p1609_p13, %p1608_p12 }
  0x17   : > { %p1611_p3 = pneg %p1610_p0 }
  0x19   : > { %p1616_p7 = pnand %p1614_p5, %p1611_p3 }
  0x1b   : > { %1619 = shalt.err (!%p1616_p7)
}
  0x1c   : > { %s1620_s14 = scalar_lea.vmem %s1849_s28, 2048  ;;  %p1628_p2 = scmp.lt.s32.totalorder %s1849_s28, %s1849_s28 }
  0x1d   : > { %p1621_p9 = scmp.ne.s32.totalorder %s1849_s28, %s1620_s14  ;;  %p1629_p12 = scmp.lt.s32.totalorder %s1620_s14, %s1620_s14 }
  0x1f   : > { %p1623_p10 = pnand %p1621_p9, %p1609_p13  ;;  %p1630_p0 = por %p1629_p12, %p1628_p2 }
  0x21   : > { %p1624_p1 = pneg %p1623_p10 }
  0x23   : > { %p1631_p6 = pnand %p1630_p0, %p1624_p1 }
  0x25   : > { %1634 = shalt.err (!%p1631_p6)
}
  0x26   : > { %s1767_s15 = smov 64   ;;  %s1768_s16 = smov 4  }
  0x27   : > { %1477 = dma.hbm_to_vmem [thread:$0]  (!%p1856_p11), %s2199_s1, 2048, %s1849_s28, [#allocation6], %s1767_s15, %s1767_s15, %s1768_s16  }
  0x28   : > { %s1635_s7 = scalar_lea.hbm %s2201_s3, 1024 }
  0x29   : > { %p1636_p2 = scmp.ne.s32.totalorder %s2201_s3, %s1635_s7  ;;  %p1642_p10 = scmp.lt.u32.totalorder %s1635_s7, %s2201_s3 }
  0x2b   : > { %p1638_p1 = pnand %p1636_p2, %p1609_p13 }
  0x2d   : > { %p1639_p6 = pneg %p1638_p1 }
  0x2f   : > { %p1644_p3 = pnand %p1642_p10, %p1639_p6 }
  0x31   : > { %1647 = shalt.err (!%p1644_p3)
}
  0x32   : > { %s1648_s28 = scalar_lea.vmem %s1860_s6, 1024  ;;  %p1656_p12 = scmp.lt.s32.totalorder %s1860_s6, %s1860_s6 }
  0x33   : > { %p1649_p5 = scmp.ne.s32.totalorder %s1860_s6, %s1648_s28  ;;  %p1657_p0 = scmp.lt.s32.totalorder %s1648_s28, %s1648_s28 }
  0x35   : > { %p1651_p7 = pnand %p1649_p5, %p1609_p13  ;;  %p1658_p2 = por %p1657_p0, %p1656_p12 }
  0x37   : > { %p1652_p9 = pneg %p1651_p7 }
  0x39   : > { %p1659_p1 = pnand %p1658_p2, %p1652_p9 }
  0x3b   : > { %1662 = shalt.err (!%p1659_p1)
}
  0x3c   : > { %1480 = dma.hbm_to_vmem [thread:$0]  (!%p1856_p11), %s2201_s3, 1024, %s1860_s6, [#allocation6], %s1767_s15, %s1767_s15, %s1768_s16  }
  0x3d   : > { %s1915_s14 = sadd.s32 1, %s1763_s21   ;;  %s29_s29 = sadd.s32 1, %s1759_s20 }
  0x3e   : > { %s26_s17 = ssub.s32 %s1763_s21, %s1915_s14  ;;  %p36_p13 = scmp.ne.s32.totalorder %s1759_s20, %s1755_s19 }
  0x3f   : > { %p27_p6 = scmp.eq.s32.totalorder %s26_s17, 0  ;;  %p37_p10 = scmp.eq.s32.totalorder %s1763_s21, 0 }
  0x40   : > { %p2211_p3 = scmp.eq.s32.totalorder %s1826_s22, 1  ;;  %p1491_p7 = scmp.lt.s32.totalorder %s1763_s21, 2 }
  0x41   : > { %s1931_s27 = scalar_select %p27_p6, %s1759_s20, %s29_s29  }
  0x42   : > { %p1925_p5 = por %p2211_p3, %p36_p13  ;;  %p38_p9 = por %p37_p10, %p36_p13 }
  0x43   : > { %s208_s30 = sand.u32 1, %s1759_s20   ;;  %s1260_s6 = sshll.u32 %s1763_s21, 12 }
  0x44   : > { %s2212_s23 = scalar_select %p1925_p5, 1, 0 }
  0x45   : > { %s1187_s7 = sshll.u32 %s208_s30, 8  ;;  %s1938_s8 = scalar_lea.hbm %s2198_s0, %s1260_s6 }
  0x46   : > { %s212_s9 = scalar_lea.vmem [#allocation2], %s1187_s7  ;;  %p1942_p11 = pnand %p1491_p7, %p38_p9 }
  0x47   : > { %s220_s10 = sshll.u32 %s212_s9, 4  ;;  %s1946_s28 = scalar_lea.sflag [#allocation3], %s208_s30  ;;  %s1940_s10 = int_to_ptr.vmem [resolvable:$true] %s220_s10 }
  0x48   : > { %s1663_s12 = scalar_lea.hbm %s1938_s8, 4096  ;;  %p1665_p0 = pneg %p1942_p11 }
  0x49   : > { %p1664_p12 = scmp.ne.s32.totalorder %s1938_s8, %s1663_s12  ;;  %s1668_s17 = scalar_lea.hbm %s2198_s0, 8192 }
  0x4a   : > { %p1669_p13 = scmp.lt.u32.totalorder %s1938_s8, %s2198_s0  ;;  %p1670_p6 = scmp.lt.u32.totalorder %s1668_s17, %s1663_s12 }
  0x4b   : > { %p1666_p2 = pnand %p1665_p0, %p1664_p12  ;;  %p1672_p3 = scmp.lt.u32.totalorder %s1663_s12, %s1938_s8 }
  0x4c   : > { %p1671_p10 = por %p1670_p6, %p1669_p13 }
  0x4d   : > { %p1667_p1 = pneg %p1666_p2 }
  0x4e   : > { %p1673_p7 = por %p1672_p3, %p1671_p10 }
  0x50   : > { %p1674_p9 = pnand %p1673_p7, %p1667_p1 }
  0x52   : > { %1677 = shalt.err (!%p1674_p9)
}
  0x53   : > { %s1678_s30 = scalar_lea.vmem %s1940_s10, 4096  ;;  %s1769_s15 = smov [#allocation2]  }
  0x54   : > { %p1679_p12 = scmp.ne.s32.totalorder %s1940_s10, %s1678_s30  ;;  %s1683_s16 = sshll.u32 %s1769_s15, 4  ;;  %s1684_s16 = int_to_ptr.vmem [resolvable:$false] %s1683_s16 }
  0x55   : > { %s1685_s9 = scalar_lea.vmem %s1684_s16, 8192  ;;  %p1686_p4 = scmp.lt.s32.totalorder %s1940_s10, %s1684_s16 }
  0x56   : > { %p1681_p2 = pnand %p1679_p12, %p1665_p0  ;;  %p1687_p13 = scmp.lt.s32.totalorder %s1685_s9, %s1678_s30 }
  0x58   : > { %p1682_p5 = pneg %p1681_p2  ;;  %p1688_p6 = por %p1687_p13, %p1686_p4 }
  0x5a   : > { %p1689_p10 = pnand %p1688_p6, %p1682_p5 }
  0x5c   : > { %1692 = shalt.err (!%p1689_p10)
}
  0x5d   : > { %s1770_s12 = smov 128   ;;  %s1771_s13 = smov 8  }
  0x5e   : > { %1484 = dma.hbm_to_vmem [thread:$0]  (!%p1942_p11), %s1938_s8, 4096, %s1940_s10, %s1946_s28, %s1770_s12, %s1770_s12, %s1771_s13  }
  0x5f   : > { %232 = sbr.rel (%p1845_p8) target bundleno = 698 (0x2ba), region = 40  ;;  %s1977_s29 = sand.u32 (!%p1845_p8), 1, %s1755_s19  }
  0x60   : > { %s1192_s17 = sshll.u32 (!%p1845_p8), %s1977_s29, 8  ;;  %s235_s7 = scalar_lea.sflag (!%p1845_p8), [#allocation3], %s1977_s29 }
  0x61   : > { %s1983_s6 = scalar_lea.vmem (!%p1845_p8), [#allocation2], %s1192_s17  ;;  %p2214_p4 = scmp.ne.s32.totalorder (!%p1845_p8), %s2207_s24, 0 }
  0x66   : > { %1738 = dma.done.wait (%p2214_p4), %s235_s7, 4096  }
  0x67   : > { %1740 = vsyncadd (%p2214_p4), %s235_s7, 4294963200  ;;  %p2215_p5 = scmp.eq.s32.totalorder %s1826_s22, 0 }
  0x69   : > { %1742 = dma.done.wait (%p2215_p5), [#allocation6], 3072   ;;  %p2216_p8 = pmov %p2215_p5 }
  0x6a   : > { %v1535_v0 = vld [vmem:[#allocation5 + $0x40] sm:$0xff]   ;;  %v1537_v2 = vld [vmem:[#allocation5 + $0x48] sm:$0xff]   ;;  %v1539_v4 = vld [vmem:[#allocation5 + $0x50] sm:$0xff]   ;;  %s2083_s11 = scalar_lea.vmem [#allocation8], %s1192_s17  ;;  %s1261_s28 = sshll.u32 %s1826_s22, 12 }
  0x6b   : > { %1744 = vsyncadd (%p2216_p8), [#allocation6], 4294964224  ;;  %v1536_v1 = vld [vmem:[#allocation5] sm:$0xff]   ;;  %1262 = vmatprep.subr.bf16.mxu0 %v1535_v0  ;;  %1446 = vmatprep.subr.bf16.mxu1 %v1535_v0  ;;  %v1538_v3 = vld [vmem:[#allocation5 + $0x8] sm:$0xff]   ;;  %s1090_s30 = sshll.u32 %s2083_s11, 4  ;;  %s2148_s9 = scalar_lea.hbm %s2203_s5, %s1261_s28  ;;  %s2150_s30 = int_to_ptr.vmem [resolvable:$true] %s1090_s30 }
  0x6c   : > { %1263 = vmatpush3.bf16.msra.mxu0 %v1536_v1  ;;  %1454 = vmatpush3.bf16.msra.mxu1 %v1536_v1  ;;  %v1540_v5 = vld [vmem:[#allocation5 + $0x10] sm:$0xff]   ;;  %v1541_v6 = vld [vmem:[#allocation5 + $0x58] sm:$0xff]   ;;  %v1543_v8 = vld [vmem:[#allocation5 + $0x60] sm:$0xff]   ;;  %s1077_s22 = scalar_lea.sflag [#allocation4], %s1977_s29  ;;  %s1693_s12 = scalar_lea.vmem %s2150_s30, 4096 }
  0x6d   : > { %1264 = vmatprep.subr.bf16.mxu0 %v1537_v2  ;;  %1447 = vmatprep.subr.bf16.mxu1 %v1537_v2  ;;  %v1542_v7 = vld [vmem:[#allocation5 + $0x18] sm:$0xff]   ;;  %v1544_v9 = vld [vmem:[#allocation5 + $0x20] sm:$0xff]   ;;  %v1545_v10 = vld [vmem:[#allocation5 + $0x68] sm:$0xff]   ;;  %p1694_p11 = scmp.ne.s32.totalorder %s2150_s30, %s1693_s12  ;;  %p2217_p0 = scmp.ne.s32.totalorder %s2212_s23, 0 }
  0x6e   : > { %v1553_v11 = vld [vmem:[%s1983_s6 + $0x4] ss:$8 sps:$4 sm:$0xff]   ;;  %v1547_v13 = vld [vmem:[#allocation5 + $0x70] sm:$0xff]   ;;  %v1549_v15 = vld [vmem:[#allocation5 + $0x78] sm:$0xff]   ;;  %s1772_s13 = smov [#allocation8]  }
  0x6f   : > { %v1546_v12 = vld [vmem:[#allocation5 + $0x28] sm:$0xff]   ;;  %635 = vmatprep.mubr.bf16.mxu0 %v1553_v11  ;;  %v1548_v14 = vld [vmem:[#allocation5 + $0x30] sm:$0xff]   ;;  %v1550_v16 = vld [vmem:[#allocation5 + $0x38] sm:$0xff]   ;;  %p1695_p1 = pnand %p1694_p11, %p2217_p0  ;;  %s1697_s17 = sshll.u32 %s1772_s13, 4  ;;  %s1698_s17 = int_to_ptr.vmem [resolvable:$false] %s1697_s17 }
  0x70   : > { %1265 = vmatpush3.bf16.msra.mxu0 %v1538_v3  ;;  %1455 = vmatpush3.bf16.msra.mxu1 %v1538_v3  ;;  %v1551_v17 = vld [vmem:[%s1983_s6] ss:$8 sps:$4 sm:$0xff]   ;;  %v1583_v18 = vld [vmem:[%s1983_s6 + $0xc4] ss:$8 sps:$4 sm:$0xff]   ;;  %v1554_v19 = vld [vmem:[%s1983_s6 + $0x14] ss:$8 sps:$4 sm:$0xff]   ;;  %p1700_p7 = scmp.lt.s32.totalorder %s2150_s30, %s1698_s17 }
  0x71   : > { %1266 = vmatprep.subr.bf16.mxu0 %v1539_v4  ;;  %1448 = vmatprep.subr.bf16.mxu1 %v1539_v4  ;;  %v1581_v20 = vld [vmem:[%s1983_s6 + $0xc0] ss:$8 sps:$4 sm:$0xff]   ;;  %v1587_v21 = vld [vmem:[%s1983_s6 + $0xd4] ss:$8 sps:$4 sm:$0xff]   ;;  %v1556_v22 = vld [vmem:[%s1983_s6 + $0x10] ss:$8 sps:$4 sm:$0xff]   ;;  %p1696_p3 = pneg %p1695_p1 }
  0x72   : > { %731 = vmatprep.mubr.bf16.mxu1 %v1583_v18  ;;  %v1557_v23 = vld [vmem:[%s1983_s6 + $0x24] ss:$8 sps:$4 sm:$0xff]   ;;  %v1589_v24 = vld [vmem:[%s1983_s6 + $0xd0] ss:$8 sps:$4 sm:$0xff]   ;;  %v1559_v29 = vld [vmem:[%s1983_s6 + $0x20] ss:$8 sps:$4 sm:$0xff]  }
  0x73   : > { %v1593_v25 = vld [vmem:[%s1983_s6 + $0xe4] ss:$8 sps:$4 sm:$0xff]   ;;  %v1601_v28 = vld [vmem:[#allocation7 + $0x10] sm:$0xff]   ;;  %v1595_v31 = vld [vmem:[%s1983_s6 + $0xe0] ss:$8 sps:$4 sm:$0xff]   ;;  %s1699_s7 = scalar_lea.vmem %s1698_s17, 8192 }
  0x74   : > { %1267 = vmatpush3.bf16.msra.mxu0 %v1540_v5  ;;  %1456 = vmatpush3.bf16.msra.mxu1 %v1540_v5  ;;  %v1599_v26 = vld [vmem:[#allocation7] sm:$0xff]   ;;  %v1600_v27 = vld [vmem:[#allocation7 + $0x8] sm:$0xff]   ;;  %v1560_v30 = vld [vmem:[%s1983_s6 + $0x34] ss:$8 sps:$4 sm:$0xff]   ;;  %p1701_p9 = scmp.lt.s32.totalorder %s1699_s7, %s1693_s12 }
  0x75   : > { %1268 = vmatprep.subr.bf16.mxu0 %v1541_v6  ;;  %1449 = vmatprep.subr.bf16.mxu1 %v1541_v6  ;;  %v1596_v32 = vld [vmem:[%s1983_s6 + $0xf4] ss:$8 sps:$4 sm:$0xff]   ;;  %v1562_v33 = vld [vmem:[%s1983_s6 + $0x30] ss:$8 sps:$4 sm:$0xff]   ;;  %v1563_v34 = vld [vmem:[%s1983_s6 + $0x44] ss:$8 sps:$4 sm:$0xff]  }
  0x76   : > { %v1598_v35 = vld [vmem:[%s1983_s6 + $0xf0] ss:$8 sps:$4 sm:$0xff]   ;;  %v1565_v36 = vld [vmem:[%s1983_s6 + $0x40] ss:$8 sps:$4 sm:$0xff]   ;;  %v1566_v37 = vld [vmem:[%s1983_s6 + $0x54] ss:$8 sps:$4 sm:$0xff]   ;;  %p1702_p12 = por %p1701_p9, %p1700_p7 }
  0x77   : > { %v1568_v38 = vld [vmem:[%s1983_s6 + $0x50] ss:$8 sps:$4 sm:$0xff]   ;;  %v1569_v39 = vld [vmem:[%s1983_s6 + $0x64] ss:$8 sps:$4 sm:$0xff]   ;;  %v1571_v40 = vld [vmem:[%s1983_s6 + $0x60] ss:$8 sps:$4 sm:$0xff]  }
  0x78   : > { %1269 = vmatpush3.bf16.msra.mxu0 %v1542_v7  ;;  %1457 = vmatpush3.bf16.msra.mxu1 %v1542_v7  ;;  %v1572_v41 = vld [vmem:[%s1983_s6 + $0x74] ss:$8 sps:$4 sm:$0xff]   ;;  %v1574_v42 = vld [vmem:[%s1983_s6 + $0x70] ss:$8 sps:$4 sm:$0xff]   ;;  %v1575_v43 = vld [vmem:[%s1983_s6 + $0x84] ss:$8 sps:$4 sm:$0xff]   ;;  %p1703_p2 = pnand %p1702_p12, %p1696_p3 }
  0x79   : > { %1270 = vmatprep.subr.bf16.mxu0 %v1543_v8  ;;  %1450 = vmatprep.subr.bf16.mxu1 %v1543_v8  ;;  %v1577_v44 = vld [vmem:[%s1983_s6 + $0x80] ss:$8 sps:$4 sm:$0xff]   ;;  %v1578_v45 = vld [vmem:[%s1983_s6 + $0x94] ss:$8 sps:$4 sm:$0xff]   ;;  %v1580_v46 = vld [vmem:[%s1983_s6 + $0x90] ss:$8 sps:$4 sm:$0xff]  }
  0x7a   : > { %v1584_v47 = vld [vmem:[%s1983_s6 + $0xa4] ss:$8 sps:$4 sm:$0xff]   ;;  %v1586_v48 = vld [vmem:[%s1983_s6 + $0xa0] ss:$8 sps:$4 sm:$0xff]   ;;  %v1590_v49 = vld [vmem:[%s1983_s6 + $0xb4] ss:$8 sps:$4 sm:$0xff]  }
  0x7b   : > { %v1602_v50 = vld [vmem:[#allocation7 + $0x18] sm:$0xff]   ;;  %v1603_v52 = vld [vmem:[#allocation7 + $0x20] sm:$0xff]   ;;  %v1604_v53 = vld [vmem:[#allocation7 + $0x28] sm:$0xff]  }
  0x7c   : > { %1271 = vmatpush3.bf16.msra.mxu0 %v1544_v9  ;;  %1458 = vmatpush3.bf16.msra.mxu1 %v1544_v9  ;;  %v1592_v51 = vld [vmem:[%s1983_s6 + $0xb0] ss:$8 sps:$4 sm:$0xff]   ;;  %v2028_v57 = vld [vmem:[%s2200_s2] ss:$0 sm:$0xff] }
  0x7d   : > { %1272 = vmatprep.subr.bf16.mxu0 %v1545_v10  ;;  %1451 = vmatprep.subr.bf16.mxu1 %v1545_v10  ;;  %v1605_v54 = vld [vmem:[#allocation7 + $0x30] sm:$0xff]   ;;  %v1606_v55 = vld [vmem:[#allocation7 + $0x38] sm:$0xff]  }
  0x80   : > { %1273 = vmatpush3.bf16.msra.mxu0 %v1546_v12  ;;  %1459 = vmatpush3.bf16.msra.mxu1 %v1546_v12 }
  0x81   : > { %1274 = vmatprep.subr.bf16.mxu0 %v1547_v13  ;;  %1452 = vmatprep.subr.bf16.mxu1 %v1547_v13 }
  0x84   : > { %1275 = vmatpush3.bf16.msra.mxu0 %v1548_v14  ;;  %1460 = vmatpush3.bf16.msra.mxu1 %v1548_v14 }
  0x85   : > { %1276 = vmatprep.subr.bf16.mxu0 %v1549_v15  ;;  %1453 = vmatprep.subr.bf16.mxu1 %v1549_v15 }
  0x88   : > { %1277 = vmatpush3.bf16.msra.mxu0 %v1550_v16  ;;  %1461 = vmatpush3.bf16.msra.mxu1 %v1550_v16 }
  0x89   : > { %1398 = vmatprep.subr.bf16.mxu1 %v1599_v26 }
  0x8b   : > { %636 = vmatmul.mubr.bf16.vlgmr.msra.gmra.mrb[0].mxu0 %v1551_v17  ;;  %732 = vmatmul.mubr.bf16.vlgmr.msra.gmra.mrb[0].mxu1 %v1581_v20 }
  0x8c   : > { %643 = vmatprep.mubr.bf16.mxu0 %v1554_v19  ;;  %739 = vmatprep.mubr.bf16.mxu1 %v1587_v21 }
  0x8d   : > { %1399 = vmatpush3.bf16.msra.mxu1 %v1599_v26 }
  0x8e   : > { %1400 = vmatprep.subr.bf16.mxu1 %v1600_v27 }
  0x91   : > { %1401 = vmatpush3.bf16.msra.mxu1 %v1600_v27 }
  0x92   : > { %1402 = vmatprep.subr.bf16.mxu1 %v1601_v28 }
  0x93   : > { %644 = vmatmul.mubr.bf16.gmra.mrb[4].mxu0 %v1556_v22  ;;  %740 = vmatmul.mubr.bf16.gmra.mrb[4].mxu1 %v1589_v24 }
  0x94   : > { %651 = vmatprep.mubr.bf16.mxu0 %v1557_v23  ;;  %747 = vmatprep.mubr.bf16.mxu1 %v1593_v25 }
  0x95   : > { %1403 = vmatpush3.bf16.msra.mxu1 %v1601_v28 }
  0x96   : > { %1404 = vmatprep.subr.bf16.mxu1 %v1602_v50 }
  0x99   : > { %1405 = vmatpush3.bf16.msra.mxu1 %v1602_v50 }
  0x9a   : > { %1406 = vmatprep.subr.bf16.mxu1 %v1603_v52 }
  0x9b   : > { %652 = vmatmul.mubr.bf16.gmra.mrb[8].mxu0 %v1559_v29  ;;  %748 = vmatmul.mubr.bf16.gmra.mrb[8].mxu1 %v1595_v31 }
  0x9c   : > { %659 = vmatprep.mubr.bf16.mxu0 %v1560_v30  ;;  %755 = vmatprep.mubr.bf16.mxu1 %v1596_v32 }
  0x9d   : > { %1407 = vmatpush3.bf16.msra.mxu1 %v1603_v52 }
  0x9e   : > { %1408 = vmatprep.subr.bf16.mxu1 %v1604_v53 }
  0xa1   : > { %1409 = vmatpush3.bf16.msra.mxu1 %v1604_v53 }
  0xa2   : > { %1410 = vmatprep.subr.bf16.mxu1 %v1605_v54 }
  0xa3   : > { %660 = vmatmul.mubr.bf16.gmra.mrb[12].mxu0 %v1562_v33  ;;  %756 = vmatmul.mubr.bf16.gmra.mrb[12].mxu1 %v1598_v35 }
  0xa4   : > { %667 = vmatprep.mubr.bf16.mxu0 %v1563_v34 }
  0xa5   : > { %1411 = vmatpush3.bf16.msra.mxu1 %v1605_v54 }
  0xa6   : > { %1412 = vmatprep.subr.bf16.mxu1 %v1606_v55 }
  0xa9   : > { %1413 = vmatpush3.bf16.msra.mxu1 %v1606_v55 }
  0xab   : > { %668 = vmatmul.mubr.bf16.gmra.mrb[16].mxu0 %v1565_v36 }
  0xac   : > { %675 = vmatprep.mubr.bf16.mxu0 %v1566_v37 }
  0xb3   : > { %676 = vmatmul.mubr.bf16.gmra.mrb[20].mxu0 %v1568_v38 }
  0xb4   : > { %683 = vmatprep.mubr.bf16.mxu0 %v1569_v39 }
  0xbb   : > { %684 = vmatmul.mubr.bf16.gmra.mrb[24].mxu0 %v1571_v40 }
  0xbc   : > { %691 = vmatprep.mubr.bf16.mxu0 %v1572_v41 }
  0xc3   : > { %692 = vmatmul.mubr.bf16.gmra.mrb[28].mxu0 %v1574_v42 }
  0xc4   : > { %699 = vmatprep.mubr.bf16.mxu0 %v1575_v43 }
  0xcb   : > { %700 = vmatmul.mubr.bf16.gmra.mrb[32].mxu0 %v1577_v44 }
  0xcc   : > { %707 = vmatprep.mubr.bf16.mxu0 %v1578_v45 }
  0xd3   : > { %708 = vmatmul.mubr.bf16.gmra.mrb[36].mxu0 %v1580_v46 }
  0xd4   : > { %715 = vmatprep.mubr.bf16.mxu0 %v1584_v47 }
  0xdb   : > { %716 = vmatmul.mubr.bf16.gmra.mrb[40].mxu0 %v1586_v48 }
  0xdc   : > { %723 = vmatprep.mubr.bf16.mxu0 %v1590_v49 }
  0xe3   : > { %724 = vmatmul.mubr.bf16.gmra.mrb[44].mxu0 %v1592_v51 }
 0x15e   : > { %v1278_v56 = vpop.f32.mrb[0].mxu0  ;;  %v1350_v59 = vpop.f32.mrb[0].mxu1 }
 0x15f   : > { %v1279_v58 = vpop.f32.mrb[1].mxu0  ;;  %v1351_v62 = vpop.f32.mrb[1].mxu1 }
 0x160   : > { %v1280_v60 = vadd.f32 %v1279_v58, %v1278_v56  ;;  %v1281_v61 = vpop.f32.mrb[2].mxu0  ;;  %v1352_v0 = vadd.f32 %v1351_v62, %v1350_v59  ;;  %v1353_v1 = vpop.f32.mrb[2].mxu1 }
 0x161   : > { %v1282_v63 = vpop.f32.mrb[3].mxu0  ;;  %v1354_v4 = vpop.f32.mrb[3].mxu1 }
 0x162   : > { %v638_v2 = vadd.f32 %v1280_v60, %v2028_v57  ;;  %v1283_v3 = vadd.f32 %v1282_v63, %v1281_v61  ;;  %v734_v5 = vadd.f32 %v1352_v0, %v2028_v57  ;;  %v1355_v6 = vadd.f32 %v1354_v4, %v1353_v1 }
 0x164   : > { %v641_v7 = vadd.f32 %v1283_v3, %v2028_v57  ;;  %v788_v8 = vmax.f32 %v734_v5, 0.0  ;;  %v737_v9 = vadd.f32 %v1355_v6, %v2028_v57  ;;  %v764_v10 = vmax.f32 %v638_v2, 0.0 }
 0x166   : > { %v765_v11 = vmax.f32 %v641_v7, 0.0  ;;  %v1284_v12 = vpop.f32.mrb[4].mxu0  ;;  %v789_v14 = vmax.f32 %v737_v9, 0.0  ;;  %v1356_v15 = vpop.f32.mrb[4].mxu1 }
 0x167   : > { %v1285_v13 = vpop.f32.mrb[5].mxu0  ;;  %v1357_v19 = vpop.f32.mrb[5].mxu1 }
 0x168   : > { %v1286_v16 = vadd.f32 %v1285_v13, %v1284_v12  ;;  %v1287_v17 = vpop.f32.mrb[6].mxu0  ;;  %v796_v18 = vpack.c.bf16 %v765_v11, %v764_v10  ;;  %v1358_v21 = vadd.f32 %v1357_v19, %v1356_v15  ;;  %v1359_v22 = vpop.f32.mrb[6].mxu1  ;;  %v2034_v23 = vpack.c.bf16 %v789_v14, %v788_v8 }
 0x169   : > { %v1288_v20 = vpop.f32.mrb[7].mxu0  ;;  %v1360_v26 = vpop.f32.mrb[7].mxu1 }
 0x16a   : > { %v646_v24 = vadd.f32 %v1286_v16, %v2028_v57  ;;  %v1289_v25 = vadd.f32 %v1288_v20, %v1287_v17  ;;  %1414 = vmatprep.mubr.bf16.mxu1 %v796_v18  ;;  %v742_v27 = vadd.f32 %v1358_v21, %v2028_v57  ;;  %v1361_v28 = vadd.f32 %v1360_v26, %v1359_v22 }
 0x16c   : > { %v649_v29 = vadd.f32 %v1289_v25, %v2028_v57  ;;  %v790_v30 = vmax.f32 %v742_v27, 0.0  ;;  %v745_v31 = vadd.f32 %v1361_v28, %v2028_v57  ;;  %v766_v32 = vmax.f32 %v646_v24, 0.0 }
 0x16e   : > { %v767_v33 = vmax.f32 %v649_v29, 0.0  ;;  %v1290_v34 = vpop.f32.mrb[8].mxu0  ;;  %v791_v36 = vmax.f32 %v745_v31, 0.0  ;;  %v1362_v37 = vpop.f32.mrb[8].mxu1 }
 0x16f   : > { %v1291_v35 = vpop.f32.mrb[9].mxu0  ;;  %v1363_v41 = vpop.f32.mrb[9].mxu1 }
 0x170   : > { %v797_v38 = vpack.c.bf16 %v767_v33, %v766_v32  ;;  %v1292_v39 = vadd.f32 %v1291_v35, %v1290_v34  ;;  %v1293_v40 = vpop.f32.mrb[10].mxu0  ;;  %v1364_v43 = vadd.f32 %v1363_v41, %v1362_v37  ;;  %v1365_v44 = vpop.f32.mrb[10].mxu1  ;;  %v2040_v45 = vpack.c.bf16 %v791_v36, %v790_v30 }
 0x171   : > { %v1294_v42 = vpop.f32.mrb[11].mxu0  ;;  %v1366_v48 = vpop.f32.mrb[11].mxu1 }
 0x172   : > { %v654_v46 = vadd.f32 %v1292_v39, %v2028_v57  ;;  %v1295_v47 = vadd.f32 %v1294_v42, %v1293_v40  ;;  %1415 = vmatmul.mubr.bf16.vlgmr.msra.gmra.mrb[16].mxu1 %v797_v38  ;;  %v750_v49 = vadd.f32 %v1364_v43, %v2028_v57  ;;  %v1367_v50 = vadd.f32 %v1366_v48, %v1365_v44 }
 0x174   : > { %v657_v51 = vadd.f32 %v1295_v47, %v2028_v57  ;;  %v792_v52 = vmax.f32 %v750_v49, 0.0  ;;  %v753_v53 = vadd.f32 %v1367_v50, %v2028_v57  ;;  %v768_v54 = vmax.f32 %v654_v46, 0.0 }
 0x176   : > { %v769_v55 = vmax.f32 %v657_v51, 0.0  ;;  %v1296_v56 = vpop.f32.mrb[12].mxu0  ;;  %v793_v59 = vmax.f32 %v753_v53, 0.0  ;;  %v1368_v60 = vpop.f32.mrb[12].mxu1 }
 0x177   : > { %v1297_v58 = vpop.f32.mrb[13].mxu0  ;;  %v1369_v0 = vpop.f32.mrb[13].mxu1 }
 0x178   : > { %v1298_v61 = vadd.f32 %v1297_v58, %v1296_v56  ;;  %v1299_v62 = vpop.f32.mrb[14].mxu0  ;;  %v798_v63 = vpack.c.bf16 %v769_v55, %v768_v54  ;;  %v1370_v2 = vadd.f32 %v1369_v0, %v1368_v60  ;;  %v1371_v3 = vpop.f32.mrb[14].mxu1  ;;  %v2046_v4 = vpack.c.bf16 %v793_v59, %v792_v52 }
 0x179   : > { %v1300_v1 = vpop.f32.mrb[15].mxu0  ;;  %v1372_v7 = vpop.f32.mrb[15].mxu1 }
 0x17a   : > { %v662_v5 = vadd.f32 %v1298_v61, %v2028_v57  ;;  %v1301_v6 = vadd.f32 %v1300_v1, %v1299_v62  ;;  %1418 = vmatprep.mubr.bf16.mxu1 %v798_v63  ;;  %v758_v8 = vadd.f32 %v1370_v2, %v2028_v57  ;;  %v1373_v9 = vadd.f32 %v1372_v7, %v1371_v3 }
 0x17c   : > { %v665_v10 = vadd.f32 %v1301_v6, %v2028_v57  ;;  %v794_v11 = vmax.f32 %v758_v8, 0.0  ;;  %v761_v12 = vadd.f32 %v1373_v9, %v2028_v57  ;;  %v770_v13 = vmax.f32 %v662_v5, 0.0 }
 0x17e   : > { %v771_v14 = vmax.f32 %v665_v10, 0.0  ;;  %v1302_v15 = vpop.f32.mrb[16].mxu0  ;;  %v795_v17 = vmax.f32 %v761_v12, 0.0 }
 0x17f   : > { %v1303_v16 = vpop.f32.mrb[17].mxu0 }
 0x180   : > { %v1304_v18 = vadd.f32 %v1303_v16, %v1302_v15  ;;  %v1305_v19 = vpop.f32.mrb[18].mxu0  ;;  %v799_v20 = vpack.c.bf16 %v771_v14, %v770_v13  ;;  %v2052_v22 = vpack.c.bf16 %v795_v17, %v794_v11 }
 0x181   : > { %v1306_v21 = vpop.f32.mrb[19].mxu0 }
 0x182   : > { %v670_v24 = vadd.f32 %v1304_v18, %v2028_v57  ;;  %v1307_v25 = vadd.f32 %v1306_v21, %v1305_v19  ;;  %1419 = vmatmul.mubr.bf16.gmra.mrb[20].mxu1 %v799_v20 }
 0x184   : > { %v673_v26 = vadd.f32 %v1307_v25, %v2028_v57  ;;  %v772_v27 = vmax.f32 %v670_v24, 0.0 }
 0x186   : > { %v773_v28 = vmax.f32 %v673_v26, 0.0  ;;  %v1308_v29 = vpop.f32.mrb[20].mxu0 }
 0x187   : > { %v1309_v30 = vpop.f32.mrb[21].mxu0 }
 0x188   : > { %v1310_v31 = vadd.f32 %v1309_v30, %v1308_v29  ;;  %v1311_v32 = vpop.f32.mrb[22].mxu0  ;;  %v800_v33 = vpack.c.bf16 %v773_v28, %v772_v27 }
 0x189   : > { %v1312_v34 = vpop.f32.mrb[23].mxu0 }
 0x18a   : > { %v678_v35 = vadd.f32 %v1310_v31, %v2028_v57  ;;  %v1313_v36 = vadd.f32 %v1312_v34, %v1311_v32  ;;  %1422 = vmatprep.mubr.bf16.mxu1 %v800_v33 }
 0x18c   : > { %v681_v37 = vadd.f32 %v1313_v36, %v2028_v57  ;;  %v774_v38 = vmax.f32 %v678_v35, 0.0 }
 0x18e   : > { %v775_v39 = vmax.f32 %v681_v37, 0.0  ;;  %v1314_v40 = vpop.f32.mrb[24].mxu0 }
 0x18f   : > { %v1315_v41 = vpop.f32.mrb[25].mxu0 }
 0x190   : > { %v1316_v42 = vadd.f32 %v1315_v41, %v1314_v40  ;;  %v1317_v43 = vpop.f32.mrb[26].mxu0  ;;  %v801_v44 = vpack.c.bf16 %v775_v39, %v774_v38 }
 0x191   : > { %v1318_v46 = vpop.f32.mrb[27].mxu0 }
 0x192   : > { %v686_v47 = vadd.f32 %v1316_v42, %v2028_v57  ;;  %v1319_v48 = vadd.f32 %v1318_v46, %v1317_v43  ;;  %1423 = vmatmul.mubr.bf16.gmra.mrb[24].mxu1 %v801_v44 }
 0x194   : > { %v689_v49 = vadd.f32 %v1319_v48, %v2028_v57  ;;  %v776_v50 = vmax.f32 %v686_v47, 0.0 }
 0x196   : > { %v777_v51 = vmax.f32 %v689_v49, 0.0  ;;  %v1320_v52 = vpop.f32.mrb[28].mxu0  ;;  %v2077_v49 = vld [vmem:[%s2202_s4] ss:$0 sm:$0xff] }
 0x197   : > { %v1321_v53 = vpop.f32.mrb[29].mxu0 }
 0x198   : > { %v1322_v54 = vadd.f32 %v1321_v53, %v1320_v52  ;;  %v1323_v55 = vpop.f32.mrb[30].mxu0  ;;  %v802_v56 = vpack.c.bf16 %v777_v51, %v776_v50 }
 0x199   : > { %v1324_v58 = vpop.f32.mrb[31].mxu0 }
 0x19a   : > { %v694_v59 = vadd.f32 %v1322_v54, %v2028_v57  ;;  %v1325_v60 = vadd.f32 %v1324_v58, %v1323_v55  ;;  %1426 = vmatprep.mubr.bf16.mxu1 %v802_v56 }
 0x19c   : > { %v697_v61 = vadd.f32 %v1325_v60, %v2028_v57  ;;  %v778_v62 = vmax.f32 %v694_v59, 0.0 }
 0x19e   : > { %v779_v63 = vmax.f32 %v697_v61, 0.0  ;;  %v1326_v0 = vpop.f32.mrb[32].mxu0 }
 0x19f   : > { %v1327_v1 = vpop.f32.mrb[33].mxu0 }
 0x1a0   : > { %v1328_v2 = vadd.f32 %v1327_v1, %v1326_v0  ;;  %v1329_v3 = vpop.f32.mrb[34].mxu0  ;;  %v803_v5 = vpack.c.bf16 %v779_v63, %v778_v62 }
 0x1a1   : > { %v1330_v6 = vpop.f32.mrb[35].mxu0 }
 0x1a2   : > { %v702_v7 = vadd.f32 %v1328_v2, %v2028_v57  ;;  %v1331_v8 = vadd.f32 %v1330_v6, %v1329_v3  ;;  %1427 = vmatmul.mubr.bf16.gmra.mrb[28].mxu1 %v803_v5 }
 0x1a4   : > { %v705_v9 = vadd.f32 %v1331_v8, %v2028_v57  ;;  %v780_v10 = vmax.f32 %v702_v7, 0.0 }
 0x1a6   : > { %v781_v11 = vmax.f32 %v705_v9, 0.0  ;;  %v1332_v12 = vpop.f32.mrb[36].mxu0 }
 0x1a7   : > { %v1333_v13 = vpop.f32.mrb[37].mxu0 }
 0x1a8   : > { %v1334_v14 = vadd.f32 %v1333_v13, %v1332_v12  ;;  %v1335_v15 = vpop.f32.mrb[38].mxu0  ;;  %v804_v16 = vpack.c.bf16 %v781_v11, %v780_v10 }
 0x1a9   : > { %v1336_v17 = vpop.f32.mrb[39].mxu0 }
 0x1aa   : > { %v710_v18 = vadd.f32 %v1334_v14, %v2028_v57  ;;  %v1337_v19 = vadd.f32 %v1336_v17, %v1335_v15  ;;  %1430 = vmatprep.mubr.bf16.mxu1 %v804_v16 }
 0x1ac   : > { %v713_v20 = vadd.f32 %v1337_v19, %v2028_v57  ;;  %v782_v21 = vmax.f32 %v710_v18, 0.0 }
 0x1ae   : > { %v783_v24 = vmax.f32 %v713_v20, 0.0  ;;  %v1338_v25 = vpop.f32.mrb[40].mxu0 }
 0x1af   : > { %v1339_v26 = vpop.f32.mrb[41].mxu0 }
 0x1b0   : > { %v1340_v27 = vadd.f32 %v1339_v26, %v1338_v25  ;;  %v1341_v28 = vpop.f32.mrb[42].mxu0  ;;  %v805_v29 = vpack.c.bf16 %v783_v24, %v782_v21 }
 0x1b1   : > { %v1342_v30 = vpop.f32.mrb[43].mxu0 }
 0x1b2   : > { %v718_v31 = vadd.f32 %v1340_v27, %v2028_v57  ;;  %v1343_v32 = vadd.f32 %v1342_v30, %v1341_v28  ;;  %1431 = vmatmul.mubr.bf16.gmra.mrb[32].mxu1 %v805_v29 }
 0x1b4   : > { %v721_v33 = vadd.f32 %v1343_v32, %v2028_v57  ;;  %v784_v34 = vmax.f32 %v718_v31, 0.0 }
 0x1b6   : > { %v785_v35 = vmax.f32 %v721_v33, 0.0  ;;  %v1344_v36 = vpop.f32.mrb[44].mxu0 }
 0x1b7   : > { %v1345_v37 = vpop.f32.mrb[45].mxu0 }
 0x1b8   : > { %v1346_v38 = vadd.f32 %v1345_v37, %v1344_v36  ;;  %v1347_v39 = vpop.f32.mrb[46].mxu0  ;;  %v806_v40 = vpack.c.bf16 %v785_v35, %v784_v34 }
 0x1b9   : > { %v1348_v41 = vpop.f32.mrb[47].mxu0 }
 0x1ba   : > { %v726_v42 = vadd.f32 %v1346_v38, %v2028_v57  ;;  %v1349_v43 = vadd.f32 %v1348_v41, %v1347_v39  ;;  %1434 = vmatprep.mubr.bf16.mxu1 %v806_v40 }
 0x1bc   : > { %v729_v44 = vadd.f32 %v1349_v43, %v2028_v57  ;;  %v786_v46 = vmax.f32 %v726_v42, 0.0 }
 0x1be   : > { %v787_v47 = vmax.f32 %v729_v44, 0.0 }
 0x1c0   : > { %v807_v48 = vpack.c.bf16 %v787_v47, %v786_v46 }
 0x1c2   : > { %1435 = vmatmul.mubr.bf16.gmra.mrb[36].mxu1 %v807_v48 }
 0x1c3   : > { %1438 = vmatprep.mubr.bf16.mxu1 %v2034_v23 }
 0x1ca   : > { %1439 = vmatmul.mubr.bf16.gmra.mrb[40].mxu1 %v2040_v45 }
 0x1cb   : > { %1442 = vmatprep.mubr.bf16.mxu1 %v2046_v4 }
 0x1d2   : > { %1443 = vmatmul.mubr.bf16.gmra.mrb[44].mxu1 %v2052_v22 }
 0x245   : > { %v1416_v50 = vpop.f32.mrb[16].mxu1 }
 0x246   : > { %v926_v57 = vadd.f32 %v1416_v50, %v2077_v49  ;;  %v917_v51 = vpop.f32.mrb[17].mxu1 }
 0x247   : > { %v918_v52 = vadd.f32 %v2077_v49, %v917_v51  ;;  %v1417_v53 = vpop.f32.mrb[18].mxu1 }
 0x248   : > { %1046 = vst [vmem:[%s2083_s11 + $0x10] sm:$0xff] %v926_v57  ;;  %v929_v23 = vadd.f32 %v1417_v53, %v2077_v49  ;;  %v920_v45 = vpop.f32.mrb[19].mxu1 }
 0x249   : > { %1044 = vst [vmem:[%s2083_s11] sm:$0xff] %v918_v52  ;;  %v921_v4 = vadd.f32 %v2077_v49, %v920_v45 }
 0x24a   : > { %1047 = vst [vmem:[%s2083_s11 + $0x18] sm:$0xff] %v929_v23 }
 0x24b   : > { %1045 = vst [vmem:[%s2083_s11 + $0x8] sm:$0xff] %v921_v4 }
 0x255   : > { %v1420_v22 = vpop.f32.mrb[20].mxu1 }
 0x256   : > { %v942_v54 = vadd.f32 %v1420_v22, %v2077_v49  ;;  %v933_v55 = vpop.f32.mrb[21].mxu1 }
 0x257   : > { %v934_v56 = vadd.f32 %v2077_v49, %v933_v55  ;;  %v1421_v58 = vpop.f32.mrb[22].mxu1 }
 0x258   : > { %1050 = vst [vmem:[%s2083_s11 + $0x30] sm:$0xff] %v942_v54  ;;  %v945_v59 = vadd.f32 %v1421_v58, %v2077_v49  ;;  %v936_v60 = vpop.f32.mrb[23].mxu1 }
 0x259   : > { %1048 = vst [vmem:[%s2083_s11 + $0x20] sm:$0xff] %v934_v56  ;;  %v937_v61 = vadd.f32 %v2077_v49, %v936_v60 }
 0x25a   : > { %1051 = vst [vmem:[%s2083_s11 + $0x38] sm:$0xff] %v945_v59 }
 0x25b   : > { %1049 = vst [vmem:[%s2083_s11 + $0x28] sm:$0xff] %v937_v61 }
 0x265   : > { %v1424_v62 = vpop.f32.mrb[24].mxu1 }
 0x266   : > { %v958_v63 = vadd.f32 %v1424_v62, %v2077_v49  ;;  %v949_v0 = vpop.f32.mrb[25].mxu1 }
 0x267   : > { %v950_v1 = vadd.f32 %v2077_v49, %v949_v0  ;;  %v1425_v2 = vpop.f32.mrb[26].mxu1 }
 0x268   : > { %1054 = vst [vmem:[%s2083_s11 + $0x50] sm:$0xff] %v958_v63  ;;  %v961_v3 = vadd.f32 %v1425_v2, %v2077_v49  ;;  %v952_v5 = vpop.f32.mrb[27].mxu1 }
 0x269   : > { %1052 = vst [vmem:[%s2083_s11 + $0x40] sm:$0xff] %v950_v1  ;;  %v953_v6 = vadd.f32 %v2077_v49, %v952_v5 }
 0x26a   : > { %1055 = vst [vmem:[%s2083_s11 + $0x58] sm:$0xff] %v961_v3 }
 0x26b   : > { %1053 = vst [vmem:[%s2083_s11 + $0x48] sm:$0xff] %v953_v6 }
 0x275   : > { %v1428_v7 = vpop.f32.mrb[28].mxu1 }
 0x276   : > { %v974_v8 = vadd.f32 %v1428_v7, %v2077_v49  ;;  %v965_v9 = vpop.f32.mrb[29].mxu1 }
 0x277   : > { %v966_v10 = vadd.f32 %v2077_v49, %v965_v9  ;;  %v1429_v11 = vpop.f32.mrb[30].mxu1 }
 0x278   : > { %1058 = vst [vmem:[%s2083_s11 + $0x70] sm:$0xff] %v974_v8  ;;  %v977_v12 = vadd.f32 %v1429_v11, %v2077_v49  ;;  %v968_v13 = vpop.f32.mrb[31].mxu1 }
 0x279   : > { %1056 = vst [vmem:[%s2083_s11 + $0x60] sm:$0xff] %v966_v10  ;;  %v969_v14 = vadd.f32 %v2077_v49, %v968_v13 }
 0x27a   : > { %1059 = vst [vmem:[%s2083_s11 + $0x78] sm:$0xff] %v977_v12 }
 0x27b   : > { %1057 = vst [vmem:[%s2083_s11 + $0x68] sm:$0xff] %v969_v14 }
 0x285   : > { %v1432_v15 = vpop.f32.mrb[32].mxu1 }
 0x286   : > { %v990_v16 = vadd.f32 %v1432_v15, %v2077_v49  ;;  %v981_v17 = vpop.f32.mrb[33].mxu1 }
 0x287   : > { %v982_v18 = vadd.f32 %v2077_v49, %v981_v17  ;;  %v1433_v19 = vpop.f32.mrb[34].mxu1 }
 0x288   : > { %1062 = vst [vmem:[%s2083_s11 + $0x90] sm:$0xff] %v990_v16  ;;  %v993_v20 = vadd.f32 %v1433_v19, %v2077_v49  ;;  %v984_v21 = vpop.f32.mrb[35].mxu1 }
 0x289   : > { %1060 = vst [vmem:[%s2083_s11 + $0x80] sm:$0xff] %v982_v18  ;;  %v985_v24 = vadd.f32 %v2077_v49, %v984_v21 }
 0x28a   : > { %1063 = vst [vmem:[%s2083_s11 + $0x98] sm:$0xff] %v993_v20 }
 0x28b   : > { %1061 = vst [vmem:[%s2083_s11 + $0x88] sm:$0xff] %v985_v24 }
 0x295   : > { %v1436_v25 = vpop.f32.mrb[36].mxu1 }
 0x296   : > { %v1006_v26 = vadd.f32 %v1436_v25, %v2077_v49  ;;  %v997_v27 = vpop.f32.mrb[37].mxu1 }
 0x297   : > { %v998_v28 = vadd.f32 %v2077_v49, %v997_v27  ;;  %v1437_v29 = vpop.f32.mrb[38].mxu1 }
 0x298   : > { %1066 = vst [vmem:[%s2083_s11 + $0xb0] sm:$0xff] %v1006_v26  ;;  %v1009_v30 = vadd.f32 %v1437_v29, %v2077_v49  ;;  %v1000_v31 = vpop.f32.mrb[39].mxu1 }
 0x299   : > { %1064 = vst [vmem:[%s2083_s11 + $0xa0] sm:$0xff] %v998_v28  ;;  %v1001_v32 = vadd.f32 %v2077_v49, %v1000_v31 }
 0x29a   : > { %1067 = vst [vmem:[%s2083_s11 + $0xb8] sm:$0xff] %v1009_v30 }
 0x29b   : > { %1065 = vst [vmem:[%s2083_s11 + $0xa8] sm:$0xff] %v1001_v32 }
 0x29d   : > { %v1440_v33 = vpop.f32.mrb[40].mxu1 }
 0x29e   : > { %v1022_v34 = vadd.f32 %v1440_v33, %v2077_v49  ;;  %v1013_v35 = vpop.f32.mrb[41].mxu1 }
 0x29f   : > { %v1014_v36 = vadd.f32 %v2077_v49, %v1013_v35  ;;  %v1441_v37 = vpop.f32.mrb[42].mxu1 }
 0x2a0   : > { %1070 = vst [vmem:[%s2083_s11 + $0xd0] sm:$0xff] %v1022_v34  ;;  %v1025_v38 = vadd.f32 %v1441_v37, %v2077_v49  ;;  %v1016_v39 = vpop.f32.mrb[43].mxu1 }
 0x2a1   : > { %1068 = vst [vmem:[%s2083_s11 + $0xc0] sm:$0xff] %v1014_v36  ;;  %v1017_v40 = vadd.f32 %v2077_v49, %v1016_v39 }
 0x2a2   : > { %1071 = vst [vmem:[%s2083_s11 + $0xd8] sm:$0xff] %v1025_v38 }
 0x2a3   : > { %1069 = vst [vmem:[%s2083_s11 + $0xc8] sm:$0xff] %v1017_v40 }
 0x2a5   : > { %v1444_v41 = vpop.f32.mrb[44].mxu1 }
 0x2a6   : > { %v1038_v42 = vadd.f32 %v1444_v41, %v2077_v49  ;;  %v1029_v43 = vpop.f32.mrb[45].mxu1 }
 0x2a7   : > { %v1030_v44 = vadd.f32 %v2077_v49, %v1029_v43  ;;  %v1445_v46 = vpop.f32.mrb[46].mxu1 }
 0x2a8   : > { %1074 = vst [vmem:[%s2083_s11 + $0xf0] sm:$0xff] %v1038_v42  ;;  %v1041_v47 = vadd.f32 %v1445_v46, %v2077_v49  ;;  %v1032_v48 = vpop.f32.mrb[47].mxu1 }
 0x2a9   : > { %1072 = vst [vmem:[%s2083_s11 + $0xe0] sm:$0xff] %v1030_v44  ;;  %v1033_v50 = vadd.f32 %v2077_v49, %v1032_v48 }
 0x2aa   : > { %1075 = vst [vmem:[%s2083_s11 + $0xf8] sm:$0xff] %v1041_v47 }
 0x2ab   : > { %1073 = vst [vmem:[%s2083_s11 + $0xe8] sm:$0xff] %v1033_v50 }
 0x2ac   : > { %1706 = shalt.err (!%p1703_p2)
}
 0x2ad   : > { %s1707_s6 = scalar_lea.hbm %s2148_s9, 4096  ;;  %s1711_s8 = scalar_lea.hbm %s2203_s5, 8192 }
 0x2ae   : > { %p1708_p13 = scmp.ne.s32.totalorder %s2148_s9, %s1707_s6  ;;  %p1712_p4 = scmp.lt.u32.totalorder %s2148_s9, %s2203_s5 }
 0x2af   : > { %p1713_p5 = scmp.lt.u32.totalorder %s1711_s8, %s1707_s6  ;;  %p1715_p11 = scmp.lt.u32.totalorder %s1707_s6, %s2148_s9 }
 0x2b0   : > { %p1709_p6 = pnand %p1708_p13, %p2217_p0 }
 0x2b1   : > { %p1714_p8 = por %p1713_p5, %p1712_p4 }
 0x2b2   : > { %p1710_p10 = pneg %p1709_p6 }
 0x2b3   : > { %p1716_p1 = por %p1715_p11, %p1714_p8 }
 0x2b5   : > { %p1717_p3 = pnand %p1716_p1, %p1710_p10 }
 0x2b7   : > { %1720 = shalt.err (!%p1717_p3)
}
 0x2b8   : > { %s1773_s28 = smov 128   ;;  %s1774_s15 = smov 8  }
 0x2b9   : > { %1472 = dma.vmem_to_hbm [thread:$0]  (%p2217_p0), %s2150_s30, 4096, %s2148_s9, %s1077_s22, %s1773_s28, %s1773_s28, %s1774_s15  }
 0x2ba PF: > { %s1105_s16 = sand.u32 1, %s1751_s18   ;;  %p2218_p7 = scmp.ne.s32.totalorder %s2208_s25, 0 }
 0x2bb   : > { %p2219_p9 = scmp.ge.s32.totalorder %s1763_s21, 2  ;;  %s1106_s12 = scalar_lea.sflag [#allocation4], %s1105_s16 }
 0x2bd   : > { %p1486_p12 = pnand %p2219_p9, %p2218_p7 }
 0x2bf   : > { %1746 = dma.done.wait (!%p1486_p12), %s1106_s12, 4096  }
 0x2c0   : > { %1748 = vsyncadd (!%p1486_p12), %s1106_s12, 4294963200  ;;  %p19_p2 = scmp.ge.s32.totalorder %s1915_s14, 4   ;;  %s2220_s18 = smov %s1755_s19 }
 0x2c1   : > { %s2221_s19 = smov %s1759_s20  ;;  %s2222_s20 = smov %s1931_s27 }
 0x2c2   : > { %s2223_s21 = smov %s1915_s14  ;;  %21 = sbr.rel (!%p19_p2) target bundleno = 6 (0x6), region = 93 }
 0x2c9   :  { %1111 = vsyncpa [#allocation3], 1 }
 0x2ca   :  { %1113 = vsyncpa [#allocation3 + $0x1], 1 }
 0x2cb   :  { %1114 = vsyncpa [#allocation6], 1 }
 0x2cc   :  { %1115 = vsyncpa [#allocation4], 1 }
 0x2cd   :  { %1117 = vsyncpa [#allocation4 + $0x1], 1 }

</bundles_post_ra>
